<compile_context>
chip_gen: v5e
topology: v5e:2x2
jax: 0.10.0
libtpu: 0.0.40
codegen_flags: <defaults>
</compile_context>

<pallas_src>
import jax
import jax.numpy as jnp
from jax.experimental import pallas as pl
from jax.experimental.pallas import tpu as pltpu

LANE = 128  # final-layer output padded to a lane-dense 128-wide slab


def _round_up(x, m):
    return (x + m - 1) // m * m


# ----------------------------- Pallas kernel ------------------------------ #
def user_tower_mlp_kernel(emb_ref, feat_ref,
                          w1e_ref, w1f_ref, b1_ref,
                          w2_ref, b2_ref,
                          w3_ref, b3_ref,
                          o_ref):
    """One batch tile of the fused MLP head (Linear-ReLU-Linear-ReLU-Linear).

    emb_ref  : (TB, E)     embedding rows for this batch tile
    feat_ref : (TB, F)     feature rows for this batch tile
    w1e_ref  : (E, 128)    first layer, embedding half of W1
    w1f_ref  : (F, 128)    first layer, feature half of W1
    b1_ref   : (1, 128)    f32
    w2_ref   : (128, 64)   b2_ref: (1, 64)  f32
    w3_ref   : (64, 128)   output-padded to 128 lanes; b3_ref: (1, 128) f32
    o_ref    : (TB, 128)   lane-dense f32 output slab (first E lanes are real)
    """
    # Layer 1: split matmul replaces concat([emb, feat]) @ W1 (no HBM concat).
    h1 = jnp.dot(emb_ref[...], w1e_ref[...], preferred_element_type=jnp.float32)
    h1 = h1 + jnp.dot(feat_ref[...], w1f_ref[...],
                      preferred_element_type=jnp.float32)
    h1 = jnp.maximum(h1 + b1_ref[...], 0.0).astype(w2_ref.dtype)
    # Layer 2
    h2 = jnp.dot(h1, w2_ref[...], preferred_element_type=jnp.float32) + b2_ref[...]
    h2 = jnp.maximum(h2, 0.0).astype(w3_ref.dtype)
    # Layer 3 -- lane-padded output => unmasked, full-width stores.
    out = jnp.dot(h2, w3_ref[...], preferred_element_type=jnp.float32) + b3_ref[...]
    o_ref[...] = out.astype(o_ref.dtype)


# ------------------------------ wrapper ----------------------------------- #
def user_tower_forward(user_id, user_features, params, *,
                       block_b=512, compute_dtype=jnp.float32):
    """Reproduces UserTower.forward.

    user_id       : (B,)  int32 indices into the embedding table
    user_features : (B, F) float32
    returns       : (B, E) float32
    """
    emb_table = params["embedding"]
    E = emb_table.shape[1]
    F = user_features.shape[1]
    B = user_id.shape[0]
    H1 = params["w1"].shape[1]   # 128
    H2 = params["w2"].shape[1]   # 64

    # Embedding lookup (glue, plain JAX gather) -- same as nn.Embedding(user_id).
    user_embed = jnp.take(emb_table, user_id, axis=0)                 # (B, E)

    # Batch tile: largest tile <= block_b, sublane aligned (bf16 packs 16 rows).
    sublane = 16 if compute_dtype == jnp.bfloat16 else 8
    tb = max(sublane,
             min(_round_up(block_b, sublane), _round_up(B, sublane)))
    b_pad = _round_up(B, tb)
    if b_pad != B:
        pad = b_pad - B
        user_embed = jnp.pad(user_embed, ((0, pad), (0, 0)))
        user_features = jnp.pad(user_features, ((0, pad), (0, 0)))

    # Split W1 (removes the concat) and pad the last layer to 128 output lanes.
    w1e = params["w1"][:E].astype(compute_dtype)                      # (E, 128)
    w1f = params["w1"][E:].astype(compute_dtype)                      # (F, 128)
    w2 = params["w2"].astype(compute_dtype)                           # (128, 64)
    w3 = jnp.pad(params["w3"], ((0, 0), (0, LANE - E))).astype(compute_dtype)
    b1 = params["b1"].astype(jnp.float32)
    b2 = params["b2"].astype(jnp.float32)
    b3 = jnp.pad(params["b3"], ((0, 0), (0, LANE - E))).astype(jnp.float32)

    emb = user_embed.astype(compute_dtype)
    feat = user_features.astype(compute_dtype)

    grid = (b_pad // tb,)

    # Advisory cost estimate for XLA's scheduler.
    act_bytes = (b_pad * (E + F) * emb.dtype.itemsize) + b_pad * LANE * 4
    w_bytes = sum(int(a.size) * a.dtype.itemsize
                  for a in (w1e, w1f, w2, w3, b1, b2, b3))
    flops = 2 * b_pad * (E * H1 + F * H1 + H1 * H2 + H2 * LANE)

    out_padded = pl.pallas_call(
        user_tower_mlp_kernel,
        out_shape=jax.ShapeDtypeStruct((b_pad, LANE), jnp.float32),
        grid=grid,
        in_specs=[
            pl.BlockSpec((tb, E), lambda i: (i, 0)),       # emb tile
            pl.BlockSpec((tb, F), lambda i: (i, 0)),       # feature tile
            pl.BlockSpec((E, H1), lambda i: (0, 0)),       # resident weights
            pl.BlockSpec((F, H1), lambda i: (0, 0)),
            pl.BlockSpec((1, H1), lambda i: (0, 0)),
            pl.BlockSpec((H1, H2), lambda i: (0, 0)),
            pl.BlockSpec((1, H2), lambda i: (0, 0)),
            pl.BlockSpec((H2, LANE), lambda i: (0, 0)),
            pl.BlockSpec((1, LANE), lambda i: (0, 0)),
        ],
        out_specs=pl.BlockSpec((tb, LANE), lambda i: (i, 0)),
        compiler_params=pltpu.CompilerParams(
            dimension_semantics=("parallel",),
            vmem_limit_bytes=64 * 1024 * 1024,
        ),
        cost_estimate=pl.CostEstimate(
            flops=int(flops),
            transcendentals=0,
            bytes_accessed=int(act_bytes + w_bytes),
        ),
    )(emb, feat, w1e, w1f, b1, w2, b2, w3, b3)

    # Drop batch padding and lane padding.
    return out_padded[:B, :E]


# -------------------------- parameter creation ----------------------------- #
def init_params(key, num_users, user_feature_dim, embedding_dim=32):
    d_in = user_feature_dim + embedding_dim
    keys = jax.random.split(key, 7)

    def dense(k, fan_in, fan_out):
        bound = 1.0 / jnp.sqrt(jnp.float32(fan_in))
        return jax.random.uniform(
            k, (fan_in, fan_out), jnp.float32, minval=-bound, maxval=bound
        )

    params = {
        # nn.Embedding(num_users, embedding_dim): N(0, 1) init.
        "embedding": jax.random.normal(
            keys[0], (num_users, embedding_dim), jnp.float32
        ),
        "w1": dense(keys[1], d_in, 128),
        "b1": jax.random.uniform(keys[2], (1, 128), jnp.float32,
                                 minval=-1.0 / jnp.sqrt(jnp.float32(d_in)),
                                 maxval=1.0 / jnp.sqrt(jnp.float32(d_in))),
        "w2": dense(keys[3], 128, 64),
        "b2": jax.random.uniform(keys[4], (1, 64), jnp.float32,
                                 minval=-1.0 / jnp.sqrt(128.0),
                                 maxval=1.0 / jnp.sqrt(128.0)),
        "w3": dense(keys[5], 64, embedding_dim),
        "b3": jax.random.uniform(keys[6], (1, embedding_dim), jnp.float32,
                                 minval=-1.0 / jnp.sqrt(64.0),
                                 maxval=1.0 / jnp.sqrt(64.0)),
    }
    return params


# ---------------------------- reference (JAX) ------------------------------ #
def user_tower_reference(user_id, user_features, params):
    x = jnp.concatenate(
        [jnp.take(params["embedding"], user_id, axis=0), user_features], axis=1
    )
    h1 = jnp.maximum(x @ params["w1"] + params["b1"], 0.0)
    h2 = jnp.maximum(h1 @ params["w2"] + params["b2"], 0.0)
    return h2 @ params["w3"] + params["b3"]


if __name__ == "__main__":
    num_users = 100
    user_feature_dim = 16
    embedding_dim = 32
    batch = 8

    key = jax.random.PRNGKey(0)
    k_params, k_id, k_feat, k_id2, k_feat2 = jax.random.split(key, 5)

    params = init_params(k_params, num_users, user_feature_dim, embedding_dim)

    # --- small demo batch (single grid step, f32) ---
    user_id = jax.random.randint(k_id, (batch,), 0, num_users, dtype=jnp.int32)
    user_features = jax.random.normal(
        k_feat, (batch, user_feature_dim), jnp.float32
    )
    out = jax.block_until_ready(user_tower_forward(user_id, user_features, params))
    ref = user_tower_reference(user_id, user_features, params)
    assert out.shape == (batch, embedding_dim)
    assert jnp.allclose(out, ref, atol=1e-4, rtol=1e-4)

    # --- gridded path: batch not a multiple of the tile, 4 grid steps ---
    big_batch = 200
    uid2 = jax.random.randint(k_id2, (big_batch,), 0, num_users, dtype=jnp.int32)
    feat2 = jax.random.normal(k_feat2, (big_batch, user_feature_dim), jnp.float32)
    ref2 = user_tower_reference(uid2, feat2, params)

    out_f32 = jax.block_until_ready(
        user_tower_forward(uid2, feat2, params, block_b=64))
    assert out_f32.shape == (big_batch, embedding_dim)
    assert jnp.allclose(out_f32, ref2, atol=1e-4, rtol=1e-4)

    # --- bf16 compute path (f32 accumulation), looser tolerance ---
    out_bf16 = jax.block_until_ready(
        user_tower_forward(uid2, feat2, params, block_b=64,
                           compute_dtype=jnp.bfloat16))
    assert jnp.allclose(out_bf16, ref2, atol=5e-2, rtol=5e-2)

    print("KERNEL_OK")
</pallas_src>

<mosaic_0001>
module attributes {stable_mosaic.version = 11 : i64} {
  func.func @user_tower_mlp_kernel(%arg0: i32, %arg1: memref<8x32xf32, #tpu.memory_space<vmem>>, %arg2: memref<8x16xf32, #tpu.memory_space<vmem>>, %arg3: memref<32x128xf32, #tpu.memory_space<vmem>>, %arg4: memref<16x128xf32, #tpu.memory_space<vmem>>, %arg5: memref<1x128xf32, #tpu.memory_space<vmem>>, %arg6: memref<128x64xf32, #tpu.memory_space<vmem>>, %arg7: memref<1x64xf32, #tpu.memory_space<vmem>>, %arg8: memref<64x128xf32, #tpu.memory_space<vmem>>, %arg9: memref<1x128xf32, #tpu.memory_space<vmem>>, %arg10: memref<8x128xf32, #tpu.memory_space<vmem>>) attributes {dimension_semantics = [#tpu.dimension_semantics<parallel>], iteration_bounds = array<i64: 1>, scalar_prefetch = 0 : i64, scratch_operands = 0 : i64, tpu.core_type = #tpu.core_type<tc>, window_params = [{transform_indices = @transform_0, window_bounds = array<i64: 8, 32>}, {transform_indices = @transform_1, window_bounds = array<i64: 8, 16>}, {pipeline_mode = #tpu.pipeline_mode<synchronous>, transform_indices = @transform_2, window_bounds = array<i64: 32, 128>}, {pipeline_mode = #tpu.pipeline_mode<synchronous>, transform_indices = @transform_3, window_bounds = array<i64: 16, 128>}, {pipeline_mode = #tpu.pipeline_mode<synchronous>, transform_indices = @transform_4, window_bounds = array<i64: 1, 128>}, {pipeline_mode = #tpu.pipeline_mode<synchronous>, transform_indices = @transform_5, window_bounds = array<i64: 128, 64>}, {pipeline_mode = #tpu.pipeline_mode<synchronous>, transform_indices = @transform_6, window_bounds = array<i64: 1, 64>}, {pipeline_mode = #tpu.pipeline_mode<synchronous>, transform_indices = @transform_7, window_bounds = array<i64: 64, 128>}, {pipeline_mode = #tpu.pipeline_mode<synchronous>, transform_indices = @transform_8, window_bounds = array<i64: 1, 128>}, {transform_indices = @transform_9, window_bounds = array<i64: 8, 128>}]} {
    %c0 = arith.constant 0 : index
    %c0_0 = arith.constant 0 : index
    %0 = vector.load %arg1[%c0, %c0_0] : memref<8x32xf32, #tpu.memory_space<vmem>>, vector<8x32xf32>
    %c0_1 = arith.constant 0 : index
    %c0_2 = arith.constant 0 : index
    %1 = vector.load %arg3[%c0_1, %c0_2] : memref<32x128xf32, #tpu.memory_space<vmem>>, vector<32x128xf32>
    %cst = arith.constant dense<0.000000e+00> : vector<8x128xf32>
    %2 = tpu.matmul %0, %1, %cst {dimension_numbers = #tpu.dot_dimension_numbers<[1], [0], [0], [1], [0, 0, 1, 1], [], []>} : vector<8x32xf32>, vector<32x128xf32>, vector<8x128xf32> -> vector<8x128xf32>
    %c0_3 = arith.constant 0 : index
    %c0_4 = arith.constant 0 : index
    %3 = vector.load %arg2[%c0_3, %c0_4] : memref<8x16xf32, #tpu.memory_space<vmem>>, vector<8x16xf32>
    %c0_5 = arith.constant 0 : index
    %c0_6 = arith.constant 0 : index
    %4 = vector.load %arg4[%c0_5, %c0_6] : memref<16x128xf32, #tpu.memory_space<vmem>>, vector<16x128xf32>
    %cst_7 = arith.constant dense<0.000000e+00> : vector<8x128xf32>
    %5 = tpu.matmul %3, %4, %cst_7 {dimension_numbers = #tpu.dot_dimension_numbers<[1], [0], [0], [1], [0, 0, 1, 1], [], []>} : vector<8x16xf32>, vector<16x128xf32>, vector<8x128xf32> -> vector<8x128xf32>
    %6 = arith.addf %2, %5 : vector<8x128xf32>
    %c0_8 = arith.constant 0 : index
    %c0_9 = arith.constant 0 : index
    %7 = vector.load %arg5[%c0_8, %c0_9] : memref<1x128xf32, #tpu.memory_space<vmem>>, vector<1x128xf32>
    %8 = vector.broadcast %7 : vector<1x128xf32> to vector<8x128xf32>
    %9 = arith.addf %6, %8 : vector<8x128xf32>
    %cst_10 = arith.constant 0.000000e+00 : f32
    %10 = vector.broadcast %cst_10 : f32 to vector<8x128xf32>
    %11 = arith.maximumf %9, %10 : vector<8x128xf32>
    %c0_11 = arith.constant 0 : index
    %c0_12 = arith.constant 0 : index
    %12 = vector.load %arg6[%c0_11, %c0_12] : memref<128x64xf32, #tpu.memory_space<vmem>>, vector<128x64xf32>
    %cst_13 = arith.constant dense<0.000000e+00> : vector<8x64xf32>
    %13 = tpu.matmul %11, %12, %cst_13 {dimension_numbers = #tpu.dot_dimension_numbers<[1], [0], [0], [1], [0, 0, 1, 1], [], []>} : vector<8x128xf32>, vector<128x64xf32>, vector<8x64xf32> -> vector<8x64xf32>
    %c0_14 = arith.constant 0 : index
    %c0_15 = arith.constant 0 : index
    %14 = vector.load %arg7[%c0_14, %c0_15] : memref<1x64xf32, #tpu.memory_space<vmem>>, vector<1x64xf32>
    %15 = vector.broadcast %14 : vector<1x64xf32> to vector<8x64xf32>
    %16 = arith.addf %13, %15 : vector<8x64xf32>
    %cst_16 = arith.constant 0.000000e+00 : f32
    %17 = vector.broadcast %cst_16 : f32 to vector<8x64xf32>
    %18 = arith.maximumf %16, %17 : vector<8x64xf32>
    %c0_17 = arith.constant 0 : index
    %c0_18 = arith.constant 0 : index
    %19 = vector.load %arg8[%c0_17, %c0_18] : memref<64x128xf32, #tpu.memory_space<vmem>>, vector<64x128xf32>
    %cst_19 = arith.constant dense<0.000000e+00> : vector<8x128xf32>
    %20 = tpu.matmul %18, %19, %cst_19 {dimension_numbers = #tpu.dot_dimension_numbers<[1], [0], [0], [1], [0, 0, 1, 1], [], []>} : vector<8x64xf32>, vector<64x128xf32>, vector<8x128xf32> -> vector<8x128xf32>
    %c0_20 = arith.constant 0 : index
    %c0_21 = arith.constant 0 : index
    %21 = vector.load %arg9[%c0_20, %c0_21] : memref<1x128xf32, #tpu.memory_space<vmem>>, vector<1x128xf32>
    %22 = vector.broadcast %21 : vector<1x128xf32> to vector<8x128xf32>
    %23 = arith.addf %20, %22 : vector<8x128xf32>
    %c0_22 = arith.constant 0 : index
    %c0_23 = arith.constant 0 : index
    %24 = vector.load %arg10[%c0_22, %c0_23] : memref<8x128xf32, #tpu.memory_space<vmem>>, vector<8x128xf32>
    tpu.vector_store %arg10[%c0_22, %c0_23], %23 {strides = array<i32>} : memref<8x128xf32, #tpu.memory_space<vmem>>, vector<8x128xf32>,
    return
  }
  func.func @transform_0(%arg0: i32) -> (i32, i32) {
    %c0_i32 = arith.constant 0 : i32
    %c0_i32_0 = arith.constant 0 : i32
    return %arg0, %c0_i32 : i32, i32
  }
  func.func @transform_1(%arg0: i32) -> (i32, i32) {
    %c0_i32 = arith.constant 0 : i32
    %c0_i32_0 = arith.constant 0 : i32
    return %arg0, %c0_i32 : i32, i32
  }
  func.func @transform_2(%arg0: i32) -> (i32, i32) {
    %c0_i32 = arith.constant 0 : i32
    %c0_i32_0 = arith.constant 0 : i32
    %c0_i32_1 = arith.constant 0 : i32
    return %c0_i32, %c0_i32_0 : i32, i32
  }
  func.func @transform_3(%arg0: i32) -> (i32, i32) {
    %c0_i32 = arith.constant 0 : i32
    %c0_i32_0 = arith.constant 0 : i32
    %c0_i32_1 = arith.constant 0 : i32
    return %c0_i32, %c0_i32_0 : i32, i32
  }
  func.func @transform_4(%arg0: i32) -> (i32, i32) {
    %c0_i32 = arith.constant 0 : i32
    %c0_i32_0 = arith.constant 0 : i32
    %c0_i32_1 = arith.constant 0 : i32
    return %c0_i32, %c0_i32_0 : i32, i32
  }
  func.func @transform_5(%arg0: i32) -> (i32, i32) {
    %c0_i32 = arith.constant 0 : i32
    %c0_i32_0 = arith.constant 0 : i32
    %c0_i32_1 = arith.constant 0 : i32
    return %c0_i32, %c0_i32_0 : i32, i32
  }
  func.func @transform_6(%arg0: i32) -> (i32, i32) {
    %c0_i32 = arith.constant 0 : i32
    %c0_i32_0 = arith.constant 0 : i32
    %c0_i32_1 = arith.constant 0 : i32
    return %c0_i32, %c0_i32_0 : i32, i32
  }
  func.func @transform_7(%arg0: i32) -> (i32, i32) {
    %c0_i32 = arith.constant 0 : i32
    %c0_i32_0 = arith.constant 0 : i32
    %c0_i32_1 = arith.constant 0 : i32
    return %c0_i32, %c0_i32_0 : i32, i32
  }
  func.func @transform_8(%arg0: i32) -> (i32, i32) {
    %c0_i32 = arith.constant 0 : i32
    %c0_i32_0 = arith.constant 0 : i32
    %c0_i32_1 = arith.constant 0 : i32
    return %c0_i32, %c0_i32_0 : i32, i32
  }
  func.func @transform_9(%arg0: i32) -> (i32, i32) {
    %c0_i32 = arith.constant 0 : i32
    %c0_i32_0 = arith.constant 0 : i32
    return %arg0, %c0_i32 : i32, i32
  }
}

</mosaic_0001>

<bundles_post_ra>
// kernel: tpu_custom_call.1
= control target key start
LH: loop header
LB: loop body
LE: loop exit
PB: predicated region body
PF: predicated region fallthrough
CT: control target
= control target key end

     0   :  { %vm41_vm0 = vcmask 130048   ;;  %vm65_vm1 = vcmask 261120   ;;  %s381_s0 = inlined_call_operand.vmem [shape: f32[8,32], index: 0, kind: input, shape index: {}]   ;;  %s382_s1 = inlined_call_operand.vmem [shape: f32[8,16], index: 1, kind: input, shape index: {}]   ;;  %s383_s2 = inlined_call_operand.vmem [shape: f32[32,128], index: 2, kind: input, shape index: {}]   ;;  %s384_s3 = inlined_call_operand.vmem [shape: f32[16,128], index: 3, kind: input, shape index: {}]   ;;  %s385_s4 = inlined_call_operand.vmem [shape: f32[1,128], index: 4, kind: input, shape index: {}]   ;;  %s386_s5 = inlined_call_operand.vmem [shape: f32[128,64], index: 5, kind: input, shape index: {}]   ;;  %s387_s6 = inlined_call_operand.vmem [shape: f32[1,64], index: 6, kind: input, shape index: {}]   ;;  %s388_s7 = inlined_call_operand.vmem [shape: f32[64,128], index: 7, kind: input, shape index: {}]   ;;  %s389_s8 = inlined_call_operand.vmem [shape: f32[1,128], index: 8, kind: input, shape index: {}]   ;;  %s390_s9 = inlined_call_operand.hbm [shape: f32[8,128], index: 9, kind: output, shape index: {}]  }
   0x1   :  { %v37_v0 = vld [vmem:[%s383_s2 + $0x18] sm:$0xff]  ;;  %v36_v1 = vld [vmem:[%s383_s2 + $0x10] sm:$0xff]  ;;  %v40_v2 = vld [vmem:[%s384_s3 + $0x8] sm:$0xff] }
   0x2   :  { %81 = vmatpush.msra.mxu1 %v37_v0  ;;  %59 = vmatpush.msra.mxu0 %v40_v2  ;;  %v39_v3 = vld [vmem:[%s384_s3] sm:$0xff]  ;;  %v35_v4 = vld [vmem:[%s383_s2 + $0x8] sm:$0xff]  ;;  %v110_v6 = vld [vmem:[%s386_s5 + $0x78] sm:$0xff] }
   0x3   :  { %v38_v5 = vld [vmem:[%s382_s1] sm:$0xff]  ;;  %v109_v7 = vld [vmem:[%s386_s5 + $0x70] sm:$0xff]  ;;  %115 = vmatpush.msra.mxu2 %v110_v6  ;;  %v108_v10 = vld [vmem:[%s386_s5 + $0x68] sm:$0xff] }
   0x4   :  { %82 = vmatpush.msra.mxu1 %v36_v1  ;;  %60 = vmatpush.msra.mxu0 %v39_v3  ;;  %v34_v8 = vld [vmem:[%s383_s2] sm:$0xff] }
   0x5   :  { %189 = vmatmul.msk.f32.vlgmr.msra.gmra.mxu0 %vm41_vm0, %v38_v5  ;;  %v33_v9 = vld [vmem:[%s381_s0] sm:$0xff]  ;;  %116 = vmatpush.msra.mxu2 %v109_v7 }
   0x6   :  { %83 = vmatpush.msra.mxu1 %v35_v4  ;;  %v107_v11 = vld [vmem:[%s386_s5 + $0x60] sm:$0xff] }
   0x8   :  { %84 = vmatpush.msra.mxu1 %v34_v8 }
   0x9   :  { %14 = vsyncpa [#allocation3], 0  ;;  %190 = vmatmul.msk.f32.vlgmr.msra.gmra.mxu1 %vm65_vm1, %v33_v9  ;;  %117 = vmatpush.msra.mxu2 %v108_v10  ;;  %v106_v12 = vld [vmem:[%s386_s5 + $0x58] sm:$0xff]  ;;  %v105_v13 = vld [vmem:[%s386_s5 + $0x50] sm:$0xff]  ;;  %vm148_vm2 = vcmask 523264   ;;  %s222_s26 = smov [#allocation2]  }
   0xa   :  { %v104_v14 = vld [vmem:[%s386_s5 + $0x48] sm:$0xff]  ;;  %v103_v15 = vld [vmem:[%s386_s5 + $0x40] sm:$0xff]  ;;  %v102_v16 = vld [vmem:[%s386_s5 + $0x38] sm:$0xff]  ;;  %s178_s27 = sshll.u32 %s222_s26, 4  ;;  %s179_s27 = int_to_ptr.vmem [resolvable:$true] %s178_s27 }
   0xb   :  { %118 = vmatpush.msra.mxu2 %v107_v11  ;;  %v101_v17 = vld [vmem:[%s386_s5 + $0x30] sm:$0xff]  ;;  %v100_v18 = vld [vmem:[%s386_s5 + $0x28] sm:$0xff]  ;;  %v99_v19 = vld [vmem:[%s386_s5 + $0x20] sm:$0xff] }
   0xc   :  { %v98_v20 = vld [vmem:[%s386_s5 + $0x18] sm:$0xff]  ;;  %v97_v21 = vld [vmem:[%s386_s5 + $0x10] sm:$0xff]  ;;  %v96_v22 = vld [vmem:[%s386_s5 + $0x8] sm:$0xff] }
   0xd   :  { %119 = vmatpush.msra.mxu2 %v106_v12  ;;  %v95_v23 = vld [vmem:[%s386_s5] sm:$0xff]  ;;  %v143_v24 = vld [vmem:[%s388_s7 + $0x38] sm:$0xff]  ;;  %v142_v25 = vld [vmem:[%s388_s7 + $0x30] sm:$0xff] }
   0xe   :  { %160 = vmatpush.msra.mxu3 %v143_v24  ;;  %v141_v26 = vld [vmem:[%s388_s7 + $0x28] sm:$0xff]  ;;  %v140_v27 = vld [vmem:[%s388_s7 + $0x20] sm:$0xff]  ;;  %v139_v28 = vld [vmem:[%s388_s7 + $0x18] sm:$0xff] }
   0xf   :  { %120 = vmatpush.msra.mxu2 %v105_v13  ;;  %v193_v30 = vld [vmem:[%s385_s4] ss:$0 sm:$0xff]  ;;  %v138_v35 = vld [vmem:[%s388_s7 + $0x10] sm:$0xff]  ;;  %v137_v36 = vld [vmem:[%s388_s7 + $0x8] sm:$0xff] }
  0x10   :  { %161 = vmatpush.msra.mxu3 %v142_v25  ;;  %v136_v37 = vld [vmem:[%s388_s7] sm:$0xff]  ;;  %s180_s7 = sshll.u32 %s390_s9, 4  ;;  %s181_s7 = int_to_ptr.hbm [resolvable:$true] %s180_s7 }
  0x11   :  { %121 = vmatpush.msra.mxu2 %v104_v14  ;;  %v194_v38 = vld [vmem:[%s387_s6] ss:$0 sm:$0xff] }
  0x12   :  { %162 = vmatpush.msra.mxu3 %v141_v26  ;;  %v195_v42 = vld [vmem:[%s389_s8] ss:$0 sm:$0xff] }
  0x13   :  { %122 = vmatpush.msra.mxu2 %v103_v15 }
  0x14   :  { %163 = vmatpush.msra.mxu3 %v140_v27 }
  0x15   :  { %123 = vmatpush.msra.mxu2 %v102_v16 }
  0x16   :  { %164 = vmatpush.msra.mxu3 %v139_v28 }
  0x17   :  { %124 = vmatpush.msra.mxu2 %v101_v17 }
  0x18   :  { %165 = vmatpush.msra.mxu3 %v138_v35 }
  0x19   :  { %125 = vmatpush.msra.mxu2 %v100_v18 }
  0x1a   :  { %166 = vmatpush.msra.mxu3 %v137_v36 }
  0x1b   :  { %126 = vmatpush.msra.mxu2 %v99_v19 }
  0x1c   :  { %167 = vmatpush.msra.mxu3 %v136_v37 }
  0x1d   :  { %127 = vmatpush.msra.mxu2 %v98_v20 }
  0x1f   :  { %128 = vmatpush.msra.mxu2 %v97_v21 }
  0x21   :  { %129 = vmatpush.msra.mxu2 %v96_v22 }
  0x23   :  { %130 = vmatpush.msra.mxu2 %v95_v23 }
  0x82   :  { %v62_v29 = vpop.f32.mrf.mxu0 }
  0x86   :  { %v86_v31 = vpop.f32.mrf.mxu1 }
  0x87   :  { %v87_v32 = vadd.f32 %v86_v31, %v62_v29 }
  0x89   :  { %v93_v33 = vadd.f32 %v193_v30, %v87_v32 }
  0x8b   :  { %v94_v34 = vmax.f32 %v93_v33, 0.0 }
  0x8d   :  { %131 = vmatmul.f32.vlgmr.msra.gmra.mxu2 %v94_v34 }
 0x110   :  { %v132_v39 = vpop.f32.mrf.mxu2 }
 0x111   :  { %v133_v40 = vadd.f32 %v194_v38, %v132_v39 }
 0x113   :  { %v135_v41 = vmax.f32 %v133_v40, 0.0 }
 0x115   :  { %191 = vmatmul.msk.f32.vlgmr.msra.gmra.mxu3 %vm148_vm2, %v135_v41 }
 0x198   :  { %v169_v43 = vpop.f32.mrf.mxu3 }
 0x199   :  { %v170_v44 = vadd.f32 %v195_v42, %v169_v43 }
 0x19b   :  { %172 = vst [vmem:[#allocation2] sm:$0xff] %v170_v44 }
 0x19c   :  { %183 = dma.vmem_to_hbm [thread:$0]  %s179_s27, 128, %s181_s7, [#allocation3]  }
 0x19d   :  { %220 = dma.done.wait [#allocation3], 128  }
 0x19e   :  { %221 = vsyncadd [#allocation3], 4294967168 }
 0x19f   :  { %188 = vsyncpa [#allocation3], 1 }

</bundles_post_ra>
